<compile_context>
chip_gen: v5e
topology: v5e:2x2
jax: 0.10.0
libtpu: 0.0.40
codegen_flags: <defaults>
</compile_context>

<pallas_src>
import jax
import jax.numpy as jnp
from jax.experimental import pallas as pl
from jax.experimental.pallas import tpu as pltpu


LEAKY_SLOPE = 0.01  # torch.nn.LeakyReLU default negative_slope
LANE = 128
SUBLANE = 8


def _round_up(n, m):
    return ((n + m - 1) // m) * m


def _leaky_relu(h):
    # max(h, a*h) == LeakyReLU(h) for 0 < a < 1 (2 VALU ops vs cmp+mul+select).
    return jnp.maximum(h, LEAKY_SLOPE * h)


def _vmem_capacity_bytes():
    try:
        return int(pltpu.get_tpu_info().vmem_capacity_bytes)
    except Exception:
        return 64 * 1024 * 1024  # conservative (v7x per-TC) fallback


def _bias_fold_lanes(k, k_pad, layer_width, w_pad, num_blocks):
    """Per-block lane index carrying a constant 1.0 (for b1 folding), or None."""
    lanes = [k if k < k_pad else None]
    for _ in range(1, num_blocks):
        ok = lanes[-1] is not None and layer_width < w_pad
        lanes.append(layer_width if ok else None)
    return lanes


# --------------------------- resident fused kernel -------------------------
def _make_fused_kernel(num_blocks, num_layers, w_pad, fold_bias):
    """All blocks fused; refs: x, per-block [wxb, b1, (W,b)*...], wf_stack, out."""
    n_per_block = 2 + 2 * (num_layers - 1)

    def kernel(*refs):
        x_ref = refs[0]
        o_ref = refs[-1]
        wrefs = refs[1:-1]
        wf_ref = wrefs[-1]                      # (num_blocks*W_pad, OUT_pad) bf16

        x = x_ref[...]                          # (TB, K_pad) f32
        hs = []
        for b in range(num_blocks):
            base = b * n_per_block
            # Fused [w1 | wb]: both matmuls share LHS x -> one wide MXU pass.
            xw = jnp.dot(x.astype(jnp.bfloat16), wrefs[base][...],
                         preferred_element_type=jnp.float32)
            h = xw[:, :w_pad]
            if not fold_bias[b]:
                h = h + wrefs[base + 1][...]    # explicit bias (not folded)
            h = _leaky_relu(h)
            back = xw[:, w_pad:]                # x @ wb (no bias)

            for l in range(num_layers - 1):     # hidden FC layers
                wl = wrefs[base + 2 + 2 * l][...]
                bl = wrefs[base + 3 + 2 * l][...]
                h = _leaky_relu(
                    jnp.dot(h.astype(jnp.bfloat16), wl,
                            preferred_element_type=jnp.float32) + bl)

            hs.append(h.astype(jnp.bfloat16))
            if b + 1 < num_blocks:
                x = jnp.maximum(h + back, 0.0)  # next backcast (f32)

        # Deferred forecast: one deep-K matmul against stacked wf.
        h_cat = hs[0] if num_blocks == 1 else jnp.concatenate(hs, axis=-1)
        o_ref[...] = jnp.dot(h_cat, wf_ref[...],
                             preferred_element_type=jnp.float32)

    return kernel


# --------------------------- streaming fallback kernel ----------------------
def _make_streaming_kernel(num_layers, w_pad):
    """Weights streamed per block (grid axis 1); backcast/forecast in scratch."""

    def kernel(*refs):
        x_ref = refs[0]
        o_ref = refs[-3]
        back_sc = refs[-2]      # (TB, maxK) f32
        acc_sc = refs[-1]       # (TB, OUT_pad) f32
        wrefs = refs[1:-3]      # wxb, b1, (W,b)*(nl-1), wf  (leading block dim 1)

        blk = pl.program_id(1)

        @pl.when(blk == 0)
        def _():
            back_sc[...] = x_ref[...]
            acc_sc[...] = jnp.zeros_like(acc_sc)

        x = back_sc[...]
        wxb = wrefs[0][...][0]
        b1 = wrefs[1][...][0]
        xw = jnp.dot(x.astype(jnp.bfloat16), wxb,
                     preferred_element_type=jnp.float32)
        h = _leaky_relu(xw[:, :w_pad] + b1)
        back = xw[:, w_pad:]
        for l in range(num_layers - 1):
            wl = wrefs[2 + 2 * l][...][0]
            bl = wrefs[3 + 2 * l][...][0]
            h = _leaky_relu(
                jnp.dot(h.astype(jnp.bfloat16), wl,
                        preferred_element_type=jnp.float32) + bl)

        acc_sc[...] += jnp.dot(h.astype(jnp.bfloat16), wrefs[-1][...][0],
                               preferred_element_type=jnp.float32)
        # Lanes >= w_pad of back_sc may keep stale block-0 input, but weight rows
        # >= layer_width are zero for blocks > 0, so the stale lanes are inert.
        back_sc[:, :w_pad] = jnp.maximum(h + back, 0.0)

        @pl.when(blk == pl.num_programs(1) - 1)
        def _():
            o_ref[...] = acc_sc[...]

    return kernel


# --------------------------- weight packing --------------------------------
def _pad2(a, rows, cols):
    return jnp.pad(a, ((0, rows - a.shape[0]), (0, cols - a.shape[1])))


def _pack_block_resident(bp, in_pad, w_pad, bias_lane, prop_lane):
    """Lane-pad a block, fuse [w1|wb] (bf16), optionally fold b1 / propagate 1."""
    size_in, lw = bp["w1"].shape
    wxb = jnp.zeros((in_pad, 2 * w_pad), jnp.float32)
    wxb = wxb.at[:size_in, :lw].set(bp["w1"])
    wxb = wxb.at[:size_in, w_pad:w_pad + lw].set(bp["wb"])
    if bias_lane is not None:
        # Block input carries a constant 1.0 at `bias_lane` -> fold b1 into w1.
        wxb = wxb.at[bias_lane, :lw].set(bp["b1"][0])
        if prop_lane is not None:
            # Propagate the constant 1.0 into a padded lane of the next backcast
            # via the wb half: back[:, prop_lane] = 1 -> relu(0 + 1) = 1.
            wxb = wxb.at[bias_lane, w_pad + prop_lane].set(1.0)
    arrs = [wxb.astype(jnp.bfloat16), _pad2(bp["b1"], 1, w_pad)]  # b1 unused if folded
    for wl, bl in bp["hidden"]:
        arrs += [_pad2(wl, w_pad, w_pad).astype(jnp.bfloat16), _pad2(bl, 1, w_pad)]
    return arrs


def _stack_wf(blocks, w_pad, out_pad):
    nb = len(blocks)
    wf = jnp.zeros((nb * w_pad, out_pad), jnp.float32)
    for b, bp in enumerate(blocks):
        lw, so = bp["wf"].shape
        wf = wf.at[b * w_pad:b * w_pad + lw, :so].set(bp["wf"])
    return wf.astype(jnp.bfloat16)


def _pack_stream(blocks, k_pad, w_pad, out_pad, num_layers):
    """Stack all blocks' weights along a leading block axis (uniform shapes)."""
    nb = len(blocks)
    maxk = max(k_pad, w_pad)
    wxb = jnp.zeros((nb, maxk, 2 * w_pad), jnp.float32)
    b1 = jnp.zeros((nb, 1, w_pad), jnp.float32)
    hid_w = [jnp.zeros((nb, w_pad, w_pad), jnp.float32) for _ in range(num_layers - 1)]
    hid_b = [jnp.zeros((nb, 1, w_pad), jnp.float32) for _ in range(num_layers - 1)]
    wf = jnp.zeros((nb, w_pad, out_pad), jnp.float32)
    for b, bp in enumerate(blocks):
        si, lw = bp["w1"].shape
        wxb = wxb.at[b, :si, :lw].set(bp["w1"])
        wxb = wxb.at[b, :si, w_pad:w_pad + lw].set(bp["wb"])
        b1 = b1.at[b, 0, :lw].set(bp["b1"][0])
        for l, (wl, bl) in enumerate(bp["hidden"]):
            hid_w[l] = hid_w[l].at[b, :lw, :lw].set(wl)
            hid_b[l] = hid_b[l].at[b, 0, :lw].set(bl[0])
        lw2, so = bp["wf"].shape
        wf = wf.at[b, :lw2, :so].set(bp["wf"])
    packed = [wxb.astype(jnp.bfloat16), b1]
    for l in range(num_layers - 1):
        packed += [hid_w[l].astype(jnp.bfloat16), hid_b[l]]
    packed.append(wf.astype(jnp.bfloat16))
    return packed, maxk


# --------------------------- parameter init --------------------------------
def init_fcblock_params(key, num_layers, layer_width, size_in, size_out):
    ks = jax.random.split(key, 2 * num_layers + 2)
    scale = 0.1
    params = {
        "w1": scale * jax.random.normal(ks[0], (size_in, layer_width), jnp.float32),
        "b1": scale * jax.random.normal(ks[1], (1, layer_width), jnp.float32),
        "hidden": [],
    }
    for l in range(num_layers - 1):
        wl = scale * jax.random.normal(ks[2 + 2 * l], (layer_width, layer_width), jnp.float32)
        bl = scale * jax.random.normal(ks[3 + 2 * l], (1, layer_width), jnp.float32)
        params["hidden"].append((wl, bl))
    params["wf"] = scale * jax.random.normal(ks[-2], (layer_width, size_out), jnp.float32)
    params["wb"] = scale * jax.random.normal(ks[-1], (size_in, layer_width), jnp.float32)
    return params


def init_fcr_wn_embeddings(key, num_blocks, num_layers, layer_width, size_in,
                           size_out, embedding_dim, embedding_size, embedding_num):
    keys = jax.random.split(key, num_blocks + max(embedding_num, 1))
    first_in = size_in + embedding_dim * embedding_num
    blocks = [init_fcblock_params(keys[0], num_layers, layer_width, first_in, size_out)]
    for b in range(1, num_blocks):
        blocks.append(init_fcblock_params(keys[b], num_layers, layer_width,
                                          layer_width, size_out))
    embeddings = [
        0.1 * jax.random.normal(keys[num_blocks + i], (embedding_size, embedding_dim),
                                jnp.float32)
        for i in range(embedding_num)
    ]
    return {"blocks": blocks, "embeddings": embeddings}


# ------------------------------ forward ------------------------------------
def fcr_wn_embeddings_forward(params, x, cat_inputs, *, num_layers, layer_width,
                              size_out, batch_tile=None, force_streaming=False):
    """Forward pass matching FcrWnEmbeddings.forward (eval mode / dropout=0)."""
    num_blocks = len(params["blocks"])

    # --- glue: embedding lookup + optional mean + concat (plain JAX) ---
    ee = [x.astype(jnp.float32)]
    for i, v in enumerate(cat_inputs):
        e = params["embeddings"][i][v.astype(jnp.int32)]      # (B, D) or (B, L, D)
        if e.ndim == 3:
            e = jnp.mean(e, axis=1)
        ee.append(e)
    backcast = jnp.concatenate(ee, axis=-1)

    B, K = backcast.shape
    K_pad = _round_up(K, LANE)
    W_pad = _round_up(layer_width, LANE)
    OUT_pad = _round_up(size_out, LANE)

    # --- generation-aware VMEM limit / batch tile ---
    cap = _vmem_capacity_bytes()
    big_vmem = cap >= 128 * 1024 * 1024
    vmem_limit = (100 * 1024 * 1024) if big_vmem else (56 * 1024 * 1024)
    if batch_tile is None:
        batch_tile = 1024 if big_vmem else 512
    # Keep >= 2 grid steps when possible so "parallel" uses both v7x TCs.
    TB = min(batch_tile, max(SUBLANE, _round_up((B + 1) // 2, SUBLANE)))
    B_pad = _round_up(B, TB)
    grid_b = B_pad // TB

    # Approximate resident (bf16, single-buffered) weight footprint.
    in_pads = [K_pad] + [W_pad] * (num_blocks - 1)
    weight_bytes = 0
    for ip in in_pads:
        weight_bytes += 2 * ip * 2 * W_pad + 4 * W_pad
        weight_bytes += (num_layers - 1) * (2 * W_pad * W_pad + 4 * W_pad)
    weight_bytes += 2 * num_blocks * W_pad * OUT_pad

    flops = 0
    for ip in in_pads:
        flops += 2 * B_pad * ip * (2 * W_pad)
        flops += 2 * B_pad * W_pad * W_pad * (num_layers - 1)
    flops += 2 * B_pad * (num_blocks * W_pad) * OUT_pad

    streaming = force_streaming or (weight_bytes > int(0.55 * cap))

    if not streaming:
        # -------- resident fully-fused path --------
        lanes = _bias_fold_lanes(K, K_pad, layer_width, W_pad, num_blocks)
        fold_bias = tuple(l is not None for l in lanes)

        x_pad = jnp.pad(backcast, ((0, B_pad - B), (0, K_pad - K)))
        if lanes[0] is not None:
            x_pad = x_pad.at[:, lanes[0]].set(1.0)    # constant-1 lane (bias fold)

        packed = []
        for b, bp in enumerate(params["blocks"]):
            prop = lanes[b + 1] if (b + 1 < num_blocks) else None
            packed += _pack_block_resident(bp, in_pads[b], W_pad, lanes[b], prop)
        packed.append(_stack_wf(params["blocks"], W_pad, OUT_pad))

        kernel = _make_fused_kernel(num_blocks, num_layers, W_pad, fold_bias)
        cost = pl.CostEstimate(
            flops=flops, transcendentals=0,
            bytes_accessed=4 * B_pad * (K_pad + OUT_pad) + weight_bytes)

        def call(single_buffer_weights):
            in_specs = [pl.BlockSpec((TB, K_pad), lambda i: (i, 0))]
            for w in packed:
                if single_buffer_weights:
                    # Constant block index -> one VMEM buffer is enough.
                    in_specs.append(pl.BlockSpec(w.shape, lambda i: (0, 0),
                                                 pipeline_mode=pl.Buffered(1)))
                else:
                    in_specs.append(pl.BlockSpec(w.shape, lambda i: (0, 0)))
            out_spec = pl.BlockSpec((TB, OUT_pad), lambda i: (i, 0))
            fn = pl.pallas_call(
                kernel,
                out_shape=jax.ShapeDtypeStruct((B_pad, OUT_pad), jnp.float32),
                grid_spec=pltpu.PrefetchScalarGridSpec(
                    num_scalar_prefetch=0, grid=(grid_b,),
                    in_specs=in_specs, out_specs=out_spec),
                compiler_params=pltpu.CompilerParams(
                    dimension_semantics=("parallel",),
                    vmem_limit_bytes=vmem_limit),
                cost_estimate=cost,
            )
            return jax.block_until_ready(fn(x_pad, *packed))

        try:
            out = call(True)
        except Exception:
            # Older JAX without Buffered(1) support: default double-buffering.
            out = call(False)
    else:
        # -------- weight-streaming fallback (per-block DMA, scratch carry) ----
        packed_s, maxK = _pack_stream(params["blocks"], K_pad, W_pad, OUT_pad,
                                      num_layers)
        x_pad = jnp.pad(backcast, ((0, B_pad - B), (0, maxK - K)))
        kernel = _make_streaming_kernel(num_layers, W_pad)

        in_specs = [pl.BlockSpec((TB, maxK), lambda i, b: (i, 0))]
        for w in packed_s:
            bshape = (1,) + w.shape[1:]
            in_specs.append(pl.BlockSpec(bshape, lambda i, b: (b, 0, 0)))
        out_spec = pl.BlockSpec((TB, OUT_pad), lambda i, b: (i, 0))
        cost = pl.CostEstimate(
            flops=flops, transcendentals=0,
            bytes_accessed=4 * B_pad * (maxK + OUT_pad) + grid_b * weight_bytes)

        out = pl.pallas_call(
            kernel,
            out_shape=jax.ShapeDtypeStruct((B_pad, OUT_pad), jnp.float32),
            grid_spec=pltpu.PrefetchScalarGridSpec(
                num_scalar_prefetch=0, grid=(grid_b, num_blocks),
                in_specs=in_specs, out_specs=out_spec,
                scratch_shapes=[pltpu.VMEM((TB, maxK), jnp.float32),
                                pltpu.VMEM((TB, OUT_pad), jnp.float32)]),
            compiler_params=pltpu.CompilerParams(
                dimension_semantics=("parallel", "arbitrary"),
                vmem_limit_bytes=vmem_limit),
            cost_estimate=cost,
        )(x_pad, *packed_s)

    return {"prediction": out[:B, :size_out]}


# ---------------- pure-JAX references for verification ----------------
def _ref_forward(params, x, cat_inputs, size_out):
    ee = [x.astype(jnp.float32)]
    for i, v in enumerate(cat_inputs):
        e = params["embeddings"][i][v.astype(jnp.int32)]
        if e.ndim == 3:
            e = jnp.mean(e, axis=1)
        ee.append(e)
    backcast = jnp.concatenate(ee, axis=-1)
    forecast = jnp.zeros((x.shape[0], size_out), jnp.float32)
    for p in params["blocks"]:
        h = _leaky_relu(backcast @ p["w1"] + p["b1"])
        for wl, bl in p["hidden"]:
            h = _leaky_relu(h @ wl + bl)
        f = h @ p["wf"]
        backcast = jnp.maximum(h + backcast @ p["wb"], 0.0)
        forecast = forecast + f
    return forecast


def _ref_forward_bf16(params, x, cat_inputs, size_out, fold_bias):
    """bf16-weight / f32-accumulate reference matching the kernel's dtype path."""
    bf = jnp.bfloat16
    ee = [x.astype(jnp.float32)]
    for i, v in enumerate(cat_inputs):
        e = params["embeddings"][i][v.astype(jnp.int32)]
        if e.ndim == 3:
            e = jnp.mean(e, axis=1)
        ee.append(e)
    backcast = jnp.concatenate(ee, axis=-1)
    forecast = jnp.zeros((x.shape[0], size_out), jnp.float32)
    for b, p in enumerate(params["blocks"]):
        xb = backcast.astype(bf)
        b1 = p["b1"].astype(bf).astype(jnp.float32) if fold_bias[b] else p["b1"]
        h = _leaky_relu(jnp.dot(xb, p["w1"].astype(bf),
                                preferred_element_type=jnp.float32) + b1)
        for wl, bl in p["hidden"]:
            h = _leaky_relu(jnp.dot(h.astype(bf), wl.astype(bf),
                                    preferred_element_type=jnp.float32) + bl)
        f = jnp.dot(h.astype(bf), p["wf"].astype(bf),
                    preferred_element_type=jnp.float32)
        back = jnp.dot(xb, p["wb"].astype(bf), preferred_element_type=jnp.float32)
        backcast = jnp.maximum(h + back, 0.0)
        forecast = forecast + f
    return forecast


if __name__ == "__main__":
    # small, module-consistent config
    B = 8
    num_blocks = 2
    num_layers = 2
    layer_width = 32
    size_in = 16
    size_out = 8
    embedding_dim = 8
    embedding_size = 10
    embedding_num = 2

    key = jax.random.PRNGKey(0)
    k_param, k_x, k_c0, k_c1 = jax.random.split(key, 4)

    params = init_fcr_wn_embeddings(k_param, num_blocks, num_layers, layer_width,
                                    size_in, size_out, embedding_dim,
                                    embedding_size, embedding_num)

    x = jax.random.normal(k_x, (B, size_in), jnp.float32)
    cat0 = jax.random.randint(k_c0, (B,), 0, embedding_size)        # -> (B, D)
    cat1 = jax.random.randint(k_c1, (B, 3), 0, embedding_size)      # -> mean over dim 1

    ref_f32 = _ref_forward(params, x, (cat0, cat1), size_out)

    K = size_in + embedding_dim * embedding_num
    K_pad = _round_up(K, LANE)
    W_pad = _round_up(layer_width, LANE)
    lanes = _bias_fold_lanes(K, K_pad, layer_width, W_pad, num_blocks)
    fold = tuple(l is not None for l in lanes)

    # --- resident fully-fused path (weights VMEM-resident, bias folded) ---
    out = fcr_wn_embeddings_forward(params, x, (cat0, cat1),
                                    num_layers=num_layers,
                                    layer_width=layer_width,
                                    size_out=size_out)
    pred = jax.block_until_ready(out["prediction"])
    assert pred.shape == (B, size_out)
    ref_bf16 = _ref_forward_bf16(params, x, (cat0, cat1), size_out, fold)
    assert jnp.allclose(pred, ref_bf16, atol=5e-3, rtol=5e-3), "resident vs bf16 ref"
    assert jnp.allclose(pred, ref_f32, atol=5e-2, rtol=5e-2), "resident vs f32 ref"

    # --- streaming fallback path (forced, for coverage) ---
    out_s = fcr_wn_embeddings_forward(params, x, (cat0, cat1),
                                      num_layers=num_layers,
                                      layer_width=layer_width,
                                      size_out=size_out,
                                      force_streaming=True)
    pred_s = jax.block_until_ready(out_s["prediction"])
    ref_bf16_s = _ref_forward_bf16(params, x, (cat0, cat1), size_out,
                                   (False,) * num_blocks)
    assert jnp.allclose(pred_s, ref_bf16_s, atol=5e-3, rtol=5e-3), "stream vs bf16 ref"
    assert jnp.allclose(pred_s, ref_f32, atol=5e-2, rtol=5e-2), "stream vs f32 ref"

    print("KERNEL_OK")
</pallas_src>

<mosaic_0001>
module attributes {stable_mosaic.version = 11 : i64} {
  func.func @kernel(%arg0: i32, %arg1: memref<8x128xf32, #tpu.memory_space<vmem>>, %arg2: memref<128x256xbf16, #tpu.memory_space<vmem>>, %arg3: memref<1x128xf32, #tpu.memory_space<vmem>>, %arg4: memref<128x128xbf16, #tpu.memory_space<vmem>>, %arg5: memref<1x128xf32, #tpu.memory_space<vmem>>, %arg6: memref<128x256xbf16, #tpu.memory_space<vmem>>, %arg7: memref<1x128xf32, #tpu.memory_space<vmem>>, %arg8: memref<128x128xbf16, #tpu.memory_space<vmem>>, %arg9: memref<1x128xf32, #tpu.memory_space<vmem>>, %arg10: memref<256x128xbf16, #tpu.memory_space<vmem>>, %arg11: memref<8x128xf32, #tpu.memory_space<vmem>>) attributes {dimension_semantics = [#tpu.dimension_semantics<parallel>], iteration_bounds = array<i64: 1>, scalar_prefetch = 0 : i64, scratch_operands = 0 : i64, tpu.core_type = #tpu.core_type<tc>, window_params = [{transform_indices = @transform_0, window_bounds = array<i64: 8, 128>}, {pipeline_mode = #tpu.pipeline_mode<synchronous>, transform_indices = @transform_1, window_bounds = array<i64: 128, 256>}, {pipeline_mode = #tpu.pipeline_mode<synchronous>, transform_indices = @transform_2, window_bounds = array<i64: 1, 128>}, {pipeline_mode = #tpu.pipeline_mode<synchronous>, transform_indices = @transform_3, window_bounds = array<i64: 128, 128>}, {pipeline_mode = #tpu.pipeline_mode<synchronous>, transform_indices = @transform_4, window_bounds = array<i64: 1, 128>}, {pipeline_mode = #tpu.pipeline_mode<synchronous>, transform_indices = @transform_5, window_bounds = array<i64: 128, 256>}, {pipeline_mode = #tpu.pipeline_mode<synchronous>, transform_indices = @transform_6, window_bounds = array<i64: 1, 128>}, {pipeline_mode = #tpu.pipeline_mode<synchronous>, transform_indices = @transform_7, window_bounds = array<i64: 128, 128>}, {pipeline_mode = #tpu.pipeline_mode<synchronous>, transform_indices = @transform_8, window_bounds = array<i64: 1, 128>}, {pipeline_mode = #tpu.pipeline_mode<synchronous>, transform_indices = @transform_9, window_bounds = array<i64: 256, 128>}, {transform_indices = @transform_10, window_bounds = array<i64: 8, 128>}]} {
    %c0 = arith.constant 0 : index
    %c0_0 = arith.constant 0 : index
    %0 = vector.load %arg1[%c0, %c0_0] : memref<8x128xf32, #tpu.memory_space<vmem>>, vector<8x128xf32>
    %1 = arith.truncf %0 : vector<8x128xf32> to vector<8x128xbf16>
    %c0_1 = arith.constant 0 : index
    %c0_2 = arith.constant 0 : index
    %2 = vector.load %arg2[%c0_1, %c0_2] : memref<128x256xbf16, #tpu.memory_space<vmem>>, vector<128x256xbf16>
    %cst = arith.constant dense<0.000000e+00> : vector<8x256xf32>
    %3 = tpu.matmul %1, %2, %cst {dimension_numbers = #tpu.dot_dimension_numbers<[1], [0], [0], [1], [0, 0, 1, 1], [], []>} : vector<8x128xbf16>, vector<128x256xbf16>, vector<8x256xf32> -> vector<8x256xf32>
    %4 = vector.extract_strided_slice %3 {offsets = [0, 0], sizes = [8, 128], strides = [1, 1]} : vector<8x256xf32> to vector<8x128xf32>
    %cst_3 = arith.constant 0.00999999977 : f32
    %5 = vector.broadcast %cst_3 : f32 to vector<8x128xf32>
    %6 = arith.mulf %5, %4 : vector<8x128xf32>
    %7 = arith.maximumf %4, %6 : vector<8x128xf32>
    %8 = vector.extract_strided_slice %3 {offsets = [0, 128], sizes = [8, 128], strides = [1, 1]} : vector<8x256xf32> to vector<8x128xf32>
    %c0_4 = arith.constant 0 : index
    %c0_5 = arith.constant 0 : index
    %9 = vector.load %arg4[%c0_4, %c0_5] : memref<128x128xbf16, #tpu.memory_space<vmem>>, vector<128x128xbf16>
    %c0_6 = arith.constant 0 : index
    %c0_7 = arith.constant 0 : index
    %10 = vector.load %arg5[%c0_6, %c0_7] : memref<1x128xf32, #tpu.memory_space<vmem>>, vector<1x128xf32>
    %11 = arith.truncf %7 : vector<8x128xf32> to vector<8x128xbf16>
    %cst_8 = arith.constant dense<0.000000e+00> : vector<8x128xf32>
    %12 = tpu.matmul %11, %9, %cst_8 {dimension_numbers = #tpu.dot_dimension_numbers<[1], [0], [0], [1], [0, 0, 1, 1], [], []>} : vector<8x128xbf16>, vector<128x128xbf16>, vector<8x128xf32> -> vector<8x128xf32>
    %13 = vector.broadcast %10 : vector<1x128xf32> to vector<8x128xf32>
    %14 = arith.addf %12, %13 : vector<8x128xf32>
    %cst_9 = arith.constant 0.00999999977 : f32
    %15 = vector.broadcast %cst_9 : f32 to vector<8x128xf32>
    %16 = arith.mulf %15, %14 : vector<8x128xf32>
    %17 = arith.maximumf %14, %16 : vector<8x128xf32>
    %18 = arith.truncf %17 : vector<8x128xf32> to vector<8x128xbf16>
    %19 = arith.addf %17, %8 : vector<8x128xf32>
    %cst_10 = arith.constant 0.000000e+00 : f32
    %20 = vector.broadcast %cst_10 : f32 to vector<8x128xf32>
    %21 = arith.maximumf %19, %20 : vector<8x128xf32>
    %22 = arith.truncf %21 : vector<8x128xf32> to vector<8x128xbf16>
    %c0_11 = arith.constant 0 : index
    %c0_12 = arith.constant 0 : index
    %23 = vector.load %arg6[%c0_11, %c0_12] : memref<128x256xbf16, #tpu.memory_space<vmem>>, vector<128x256xbf16>
    %cst_13 = arith.constant dense<0.000000e+00> : vector<8x256xf32>
    %24 = tpu.matmul %22, %23, %cst_13 {dimension_numbers = #tpu.dot_dimension_numbers<[1], [0], [0], [1], [0, 0, 1, 1], [], []>} : vector<8x128xbf16>, vector<128x256xbf16>, vector<8x256xf32> -> vector<8x256xf32>
    %25 = vector.extract_strided_slice %24 {offsets = [0, 0], sizes = [8, 128], strides = [1, 1]} : vector<8x256xf32> to vector<8x128xf32>
    %cst_14 = arith.constant 0.00999999977 : f32
    %26 = vector.broadcast %cst_14 : f32 to vector<8x128xf32>
    %27 = arith.mulf %26, %25 : vector<8x128xf32>
    %28 = arith.maximumf %25, %27 : vector<8x128xf32>
    %c0_15 = arith.constant 0 : index
    %c0_16 = arith.constant 0 : index
    %29 = vector.load %arg8[%c0_15, %c0_16] : memref<128x128xbf16, #tpu.memory_space<vmem>>, vector<128x128xbf16>
    %c0_17 = arith.constant 0 : index
    %c0_18 = arith.constant 0 : index
    %30 = vector.load %arg9[%c0_17, %c0_18] : memref<1x128xf32, #tpu.memory_space<vmem>>, vector<1x128xf32>
    %31 = arith.truncf %28 : vector<8x128xf32> to vector<8x128xbf16>
    %cst_19 = arith.constant dense<0.000000e+00> : vector<8x128xf32>
    %32 = tpu.matmul %31, %29, %cst_19 {dimension_numbers = #tpu.dot_dimension_numbers<[1], [0], [0], [1], [0, 0, 1, 1], [], []>} : vector<8x128xbf16>, vector<128x128xbf16>, vector<8x128xf32> -> vector<8x128xf32>
    %33 = vector.broadcast %30 : vector<1x128xf32> to vector<8x128xf32>
    %34 = arith.addf %32, %33 : vector<8x128xf32>
    %cst_20 = arith.constant 0.00999999977 : f32
    %35 = vector.broadcast %cst_20 : f32 to vector<8x128xf32>
    %36 = arith.mulf %35, %34 : vector<8x128xf32>
    %37 = arith.maximumf %34, %36 : vector<8x128xf32>
    %38 = arith.truncf %37 : vector<8x128xf32> to vector<8x128xbf16>
    %39 = tpu.concatenate %18, %38 in 1 : vector<8x128xbf16>, vector<8x128xbf16> -> vector<8x256xbf16>
    %c0_21 = arith.constant 0 : index
    %c0_22 = arith.constant 0 : index
    %40 = vector.load %arg10[%c0_21, %c0_22] : memref<256x128xbf16, #tpu.memory_space<vmem>>, vector<256x128xbf16>
    %cst_23 = arith.constant dense<0.000000e+00> : vector<8x128xf32>
    %41 = tpu.matmul %39, %40, %cst_23 {dimension_numbers = #tpu.dot_dimension_numbers<[1], [0], [0], [1], [0, 0, 1, 1], [], []>} : vector<8x256xbf16>, vector<256x128xbf16>, vector<8x128xf32> -> vector<8x128xf32>
    %c0_24 = arith.constant 0 : index
    %c0_25 = arith.constant 0 : index
    %42 = vector.load %arg11[%c0_24, %c0_25] : memref<8x128xf32, #tpu.memory_space<vmem>>, vector<8x128xf32>
    tpu.vector_store %arg11[%c0_24, %c0_25], %41 {strides = array<i32>} : memref<8x128xf32, #tpu.memory_space<vmem>>, vector<8x128xf32>,
    return
  }
  func.func @transform_0(%arg0: i32) -> (i32, i32) {
    %c0_i32 = arith.constant 0 : i32
    %c0_i32_0 = arith.constant 0 : i32
    return %arg0, %c0_i32 : i32, i32
  }
  func.func @transform_1(%arg0: i32) -> (i32, i32) {
    %c0_i32 = arith.constant 0 : i32
    %c0_i32_0 = arith.constant 0 : i32
    %c0_i32_1 = arith.constant 0 : i32
    return %c0_i32, %c0_i32_0 : i32, i32
  }
  func.func @transform_2(%arg0: i32) -> (i32, i32) {
    %c0_i32 = arith.constant 0 : i32
    %c0_i32_0 = arith.constant 0 : i32
    %c0_i32_1 = arith.constant 0 : i32
    return %c0_i32, %c0_i32_0 : i32, i32
  }
  func.func @transform_3(%arg0: i32) -> (i32, i32) {
    %c0_i32 = arith.constant 0 : i32
    %c0_i32_0 = arith.constant 0 : i32
    %c0_i32_1 = arith.constant 0 : i32
    return %c0_i32, %c0_i32_0 : i32, i32
  }
  func.func @transform_4(%arg0: i32) -> (i32, i32) {
    %c0_i32 = arith.constant 0 : i32
    %c0_i32_0 = arith.constant 0 : i32
    %c0_i32_1 = arith.constant 0 : i32
    return %c0_i32, %c0_i32_0 : i32, i32
  }
  func.func @transform_5(%arg0: i32) -> (i32, i32) {
    %c0_i32 = arith.constant 0 : i32
    %c0_i32_0 = arith.constant 0 : i32
    %c0_i32_1 = arith.constant 0 : i32
    return %c0_i32, %c0_i32_0 : i32, i32
  }
  func.func @transform_6(%arg0: i32) -> (i32, i32) {
    %c0_i32 = arith.constant 0 : i32
    %c0_i32_0 = arith.constant 0 : i32
    %c0_i32_1 = arith.constant 0 : i32
    return %c0_i32, %c0_i32_0 : i32, i32
  }
  func.func @transform_7(%arg0: i32) -> (i32, i32) {
    %c0_i32 = arith.constant 0 : i32
    %c0_i32_0 = arith.constant 0 : i32
    %c0_i32_1 = arith.constant 0 : i32
    return %c0_i32, %c0_i32_0 : i32, i32
  }
  func.func @transform_8(%arg0: i32) -> (i32, i32) {
    %c0_i32 = arith.constant 0 : i32
    %c0_i32_0 = arith.constant 0 : i32
    %c0_i32_1 = arith.constant 0 : i32
    return %c0_i32, %c0_i32_0 : i32, i32
  }
  func.func @transform_9(%arg0: i32) -> (i32, i32) {
    %c0_i32 = arith.constant 0 : i32
    %c0_i32_0 = arith.constant 0 : i32
    %c0_i32_1 = arith.constant 0 : i32
    return %c0_i32, %c0_i32_0 : i32, i32
  }
  func.func @transform_10(%arg0: i32) -> (i32, i32) {
    %c0_i32 = arith.constant 0 : i32
    %c0_i32_0 = arith.constant 0 : i32
    return %arg0, %c0_i32 : i32, i32
  }
}

module attributes {stable_mosaic.version = 11 : i64} {
  func.func @kernel(%arg0: i32, %arg1: memref<8x128xf32, #tpu.memory_space<vmem>>, %arg2: memref<128x256xbf16, #tpu.memory_space<vmem>>, %arg3: memref<1x128xf32, #tpu.memory_space<vmem>>, %arg4: memref<128x128xbf16, #tpu.memory_space<vmem>>, %arg5: memref<1x128xf32, #tpu.memory_space<vmem>>, %arg6: memref<128x256xbf16, #tpu.memory_space<vmem>>, %arg7: memref<1x128xf32, #tpu.memory_space<vmem>>, %arg8: memref<128x128xbf16, #tpu.memory_space<vmem>>, %arg9: memref<1x128xf32, #tpu.memory_space<vmem>>, %arg10: memref<256x128xbf16, #tpu.memory_space<vmem>>, %arg11: memref<8x128xf32, #tpu.memory_space<vmem>>) attributes {dimension_semantics = [#tpu.dimension_semantics<parallel>], iteration_bounds = array<i64: 1>, scalar_prefetch = 0 : i64, scratch_operands = 0 : i64, tpu.core_type = #tpu.core_type<tc>, window_params = [{transform_indices = @transform_0, window_bounds = array<i64: 8, 128>}, {pipeline_mode = #tpu.pipeline_mode<synchronous>, transform_indices = @transform_1, window_bounds = array<i64: 128, 256>}, {pipeline_mode = #tpu.pipeline_mode<synchronous>, transform_indices = @transform_2, window_bounds = array<i64: 1, 128>}, {pipeline_mode = #tpu.pipeline_mode<synchronous>, transform_indices = @transform_3, window_bounds = array<i64: 128, 128>}, {pipeline_mode = #tpu.pipeline_mode<synchronous>, transform_indices = @transform_4, window_bounds = array<i64: 1, 128>}, {pipeline_mode = #tpu.pipeline_mode<synchronous>, transform_indices = @transform_5, window_bounds = array<i64: 128, 256>}, {pipeline_mode = #tpu.pipeline_mode<synchronous>, transform_indices = @transform_6, window_bounds = array<i64: 1, 128>}, {pipeline_mode = #tpu.pipeline_mode<synchronous>, transform_indices = @transform_7, window_bounds = array<i64: 128, 128>}, {pipeline_mode = #tpu.pipeline_mode<synchronous>, transform_indices = @transform_8, window_bounds = array<i64: 1, 128>}, {pipeline_mode = #tpu.pipeline_mode<synchronous>, transform_indices = @transform_9, window_bounds = array<i64: 256, 128>}, {transform_indices = @transform_10, window_bounds = array<i64: 8, 128>}]} {
    %c0 = arith.constant 0 : index
    %c0_0 = arith.constant 0 : index
    %0 = vector.load %arg1[%c0, %c0_0] : memref<8x128xf32, #tpu.memory_space<vmem>>, vector<8x128xf32>
    %1 = arith.truncf %0 : vector<8x128xf32> to vector<8x128xbf16>
    %c0_1 = arith.constant 0 : index
    %c0_2 = arith.constant 0 : index
    %2 = vector.load %arg2[%c0_1, %c0_2] : memref<128x256xbf16, #tpu.memory_space<vmem>>, vector<128x256xbf16>
    %cst = arith.constant dense<0.000000e+00> : vector<8x256xf32>
    %3 = tpu.matmul %1, %2, %cst {dimension_numbers = #tpu.dot_dimension_numbers<[1], [0], [0], [1], [0, 0, 1, 1], [], []>} : vector<8x128xbf16>, vector<128x256xbf16>, vector<8x256xf32> -> vector<8x256xf32>
    %4 = vector.extract_strided_slice %3 {offsets = [0, 0], sizes = [8, 128], strides = [1, 1]} : vector<8x256xf32> to vector<8x128xf32>
    %cst_3 = arith.constant 0.00999999977 : f32
    %5 = vector.broadcast %cst_3 : f32 to vector<8x128xf32>
    %6 = arith.mulf %5, %4 : vector<8x128xf32>
    %7 = arith.maximumf %4, %6 : vector<8x128xf32>
    %8 = vector.extract_strided_slice %3 {offsets = [0, 128], sizes = [8, 128], strides = [1, 1]} : vector<8x256xf32> to vector<8x128xf32>
    %c0_4 = arith.constant 0 : index
    %c0_5 = arith.constant 0 : index
    %9 = vector.load %arg4[%c0_4, %c0_5] : memref<128x128xbf16, #tpu.memory_space<vmem>>, vector<128x128xbf16>
    %c0_6 = arith.constant 0 : index
    %c0_7 = arith.constant 0 : index
    %10 = vector.load %arg5[%c0_6, %c0_7] : memref<1x128xf32, #tpu.memory_space<vmem>>, vector<1x128xf32>
    %11 = arith.truncf %7 : vector<8x128xf32> to vector<8x128xbf16>
    %cst_8 = arith.constant dense<0.000000e+00> : vector<8x128xf32>
    %12 = tpu.matmul %11, %9, %cst_8 {dimension_numbers = #tpu.dot_dimension_numbers<[1], [0], [0], [1], [0, 0, 1, 1], [], []>} : vector<8x128xbf16>, vector<128x128xbf16>, vector<8x128xf32> -> vector<8x128xf32>
    %13 = vector.broadcast %10 : vector<1x128xf32> to vector<8x128xf32>
    %14 = arith.addf %12, %13 : vector<8x128xf32>
    %cst_9 = arith.constant 0.00999999977 : f32
    %15 = vector.broadcast %cst_9 : f32 to vector<8x128xf32>
    %16 = arith.mulf %15, %14 : vector<8x128xf32>
    %17 = arith.maximumf %14, %16 : vector<8x128xf32>
    %18 = arith.truncf %17 : vector<8x128xf32> to vector<8x128xbf16>
    %19 = arith.addf %17, %8 : vector<8x128xf32>
    %cst_10 = arith.constant 0.000000e+00 : f32
    %20 = vector.broadcast %cst_10 : f32 to vector<8x128xf32>
    %21 = arith.maximumf %19, %20 : vector<8x128xf32>
    %22 = arith.truncf %21 : vector<8x128xf32> to vector<8x128xbf16>
    %c0_11 = arith.constant 0 : index
    %c0_12 = arith.constant 0 : index
    %23 = vector.load %arg6[%c0_11, %c0_12] : memref<128x256xbf16, #tpu.memory_space<vmem>>, vector<128x256xbf16>
    %cst_13 = arith.constant dense<0.000000e+00> : vector<8x256xf32>
    %24 = tpu.matmul %22, %23, %cst_13 {dimension_numbers = #tpu.dot_dimension_numbers<[1], [0], [0], [1], [0, 0, 1, 1], [], []>} : vector<8x128xbf16>, vector<128x256xbf16>, vector<8x256xf32> -> vector<8x256xf32>
    %25 = vector.extract_strided_slice %24 {offsets = [0, 0], sizes = [8, 128], strides = [1, 1]} : vector<8x256xf32> to vector<8x128xf32>
    %cst_14 = arith.constant 0.00999999977 : f32
    %26 = vector.broadcast %cst_14 : f32 to vector<8x128xf32>
    %27 = arith.mulf %26, %25 : vector<8x128xf32>
    %28 = arith.maximumf %25, %27 : vector<8x128xf32>
    %c0_15 = arith.constant 0 : index
    %c0_16 = arith.constant 0 : index
    %29 = vector.load %arg8[%c0_15, %c0_16] : memref<128x128xbf16, #tpu.memory_space<vmem>>, vector<128x128xbf16>
    %c0_17 = arith.constant 0 : index
    %c0_18 = arith.constant 0 : index
    %30 = vector.load %arg9[%c0_17, %c0_18] : memref<1x128xf32, #tpu.memory_space<vmem>>, vector<1x128xf32>
    %31 = arith.truncf %28 : vector<8x128xf32> to vector<8x128xbf16>
    %cst_19 = arith.constant dense<0.000000e+00> : vector<8x128xf32>
    %32 = tpu.matmul %31, %29, %cst_19 {dimension_numbers = #tpu.dot_dimension_numbers<[1], [0], [0], [1], [0, 0, 1, 1], [], []>} : vector<8x128xbf16>, vector<128x128xbf16>, vector<8x128xf32> -> vector<8x128xf32>
    %33 = vector.broadcast %30 : vector<1x128xf32> to vector<8x128xf32>
    %34 = arith.addf %32, %33 : vector<8x128xf32>
    %cst_20 = arith.constant 0.00999999977 : f32
    %35 = vector.broadcast %cst_20 : f32 to vector<8x128xf32>
    %36 = arith.mulf %35, %34 : vector<8x128xf32>
    %37 = arith.maximumf %34, %36 : vector<8x128xf32>
    %38 = arith.truncf %37 : vector<8x128xf32> to vector<8x128xbf16>
    %39 = tpu.concatenate %18, %38 in 1 : vector<8x128xbf16>, vector<8x128xbf16> -> vector<8x256xbf16>
    %c0_21 = arith.constant 0 : index
    %c0_22 = arith.constant 0 : index
    %40 = vector.load %arg10[%c0_21, %c0_22] : memref<256x128xbf16, #tpu.memory_space<vmem>>, vector<256x128xbf16>
    %cst_23 = arith.constant dense<0.000000e+00> : vector<8x128xf32>
    %41 = tpu.matmul %39, %40, %cst_23 {dimension_numbers = #tpu.dot_dimension_numbers<[1], [0], [0], [1], [0, 0, 1, 1], [], []>} : vector<8x256xbf16>, vector<256x128xbf16>, vector<8x128xf32> -> vector<8x128xf32>
    %c0_24 = arith.constant 0 : index
    %c0_25 = arith.constant 0 : index
    %42 = vector.load %arg11[%c0_24, %c0_25] : memref<8x128xf32, #tpu.memory_space<vmem>>, vector<8x128xf32>
    tpu.vector_store %arg11[%c0_24, %c0_25], %41 {strides = array<i32>} : memref<8x128xf32, #tpu.memory_space<vmem>>, vector<8x128xf32>,
    return
  }
  func.func @transform_0(%arg0: i32) -> (i32, i32) {
    %c0_i32 = arith.constant 0 : i32
    %c0_i32_0 = arith.constant 0 : i32
    return %arg0, %c0_i32 : i32, i32
  }
  func.func @transform_1(%arg0: i32) -> (i32, i32) {
    %c0_i32 = arith.constant 0 : i32
    %c0_i32_0 = arith.constant 0 : i32
    %c0_i32_1 = arith.constant 0 : i32
    return %c0_i32, %c0_i32_0 : i32, i32
  }
  func.func @transform_2(%arg0: i32) -> (i32, i32) {
    %c0_i32 = arith.constant 0 : i32
    %c0_i32_0 = arith.constant 0 : i32
    %c0_i32_1 = arith.constant 0 : i32
    return %c0_i32, %c0_i32_0 : i32, i32
  }
  func.func @transform_3(%arg0: i32) -> (i32, i32) {
    %c0_i32 = arith.constant 0 : i32
    %c0_i32_0 = arith.constant 0 : i32
    %c0_i32_1 = arith.constant 0 : i32
    return %c0_i32, %c0_i32_0 : i32, i32
  }
  func.func @transform_4(%arg0: i32) -> (i32, i32) {
    %c0_i32 = arith.constant 0 : i32
    %c0_i32_0 = arith.constant 0 : i32
    %c0_i32_1 = arith.constant 0 : i32
    return %c0_i32, %c0_i32_0 : i32, i32
  }
  func.func @transform_5(%arg0: i32) -> (i32, i32) {
    %c0_i32 = arith.constant 0 : i32
    %c0_i32_0 = arith.constant 0 : i32
    %c0_i32_1 = arith.constant 0 : i32
    return %c0_i32, %c0_i32_0 : i32, i32
  }
  func.func @transform_6(%arg0: i32) -> (i32, i32) {
    %c0_i32 = arith.constant 0 : i32
    %c0_i32_0 = arith.constant 0 : i32
    %c0_i32_1 = arith.constant 0 : i32
    return %c0_i32, %c0_i32_0 : i32, i32
  }
  func.func @transform_7(%arg0: i32) -> (i32, i32) {
    %c0_i32 = arith.constant 0 : i32
    %c0_i32_0 = arith.constant 0 : i32
    %c0_i32_1 = arith.constant 0 : i32
    return %c0_i32, %c0_i32_0 : i32, i32
  }
  func.func @transform_8(%arg0: i32) -> (i32, i32) {
    %c0_i32 = arith.constant 0 : i32
    %c0_i32_0 = arith.constant 0 : i32
    %c0_i32_1 = arith.constant 0 : i32
    return %c0_i32, %c0_i32_0 : i32, i32
  }
  func.func @transform_9(%arg0: i32) -> (i32, i32) {
    %c0_i32 = arith.constant 0 : i32
    %c0_i32_0 = arith.constant 0 : i32
    %c0_i32_1 = arith.constant 0 : i32
    return %c0_i32, %c0_i32_0 : i32, i32
  }
  func.func @transform_10(%arg0: i32) -> (i32, i32) {
    %c0_i32 = arith.constant 0 : i32
    %c0_i32_0 = arith.constant 0 : i32
    return %arg0, %c0_i32 : i32, i32
  }
}

</mosaic_0001>

<bundles_post_ra>
// kernel: tpu_custom_call.1
= control target key start
LH: loop header
LB: loop body
LE: loop exit
PB: predicated region body
PF: predicated region fallthrough
CT: control target
= control target key end

     0   :  { %15 = vsyncpa [#allocation3], 0  ;;  %s1245_s0 = inlined_call_operand.hbm [shape: f32[8,128], index: 0, kind: input, shape index: {}]   ;;  %s1246_s1 = inlined_call_operand.hbm [shape: bf16[128,256], index: 1, kind: input, shape index: {}]   ;;  %s1247_s2 = inlined_call_operand.vmem [shape: f32[1,128], index: 2, kind: input, shape index: {}]   ;;  %s1248_s3 = inlined_call_operand.hbm [shape: bf16[128,128], index: 3, kind: input, shape index: {}]   ;;  %s1249_s4 = inlined_call_operand.vmem [shape: f32[1,128], index: 4, kind: input, shape index: {}]   ;;  %s1250_s5 = inlined_call_operand.hbm [shape: bf16[128,256], index: 5, kind: input, shape index: {}]   ;;  %s1251_s6 = inlined_call_operand.vmem [shape: f32[1,128], index: 6, kind: input, shape index: {}]   ;;  %s1252_s7 = inlined_call_operand.hbm [shape: bf16[128,128], index: 7, kind: input, shape index: {}]   ;;  %s1253_s8 = inlined_call_operand.vmem [shape: f32[1,128], index: 8, kind: input, shape index: {}]   ;;  %s1254_s9 = inlined_call_operand.hbm [shape: bf16[256,128], index: 9, kind: input, shape index: {}]   ;;  %s1255_s10 = inlined_call_operand.hbm [shape: f32[8,128], index: 10, kind: output, shape index: {}]  }
   0x1   :  { %16 = vsyncpa [#allocation6], 0 }
   0x2   :  { %17 = vsyncpa [#allocation9], 0 }
   0x3   :  { %18 = vsyncpa [#allocation12], 0  ;;  %s35_s6 = sshll.u32 %s1246_s1, 4  ;;  %s36_s6 = int_to_ptr.hbm [resolvable:$true] %s35_s6 }
   0x4   :  { %19 = vsyncpa [#allocation4], 0  ;;  %s1152_s14 = smov [#allocation5]   ;;  %s65_s18 = sshll.u32 %s1250_s5, 4  ;;  %s66_s18 = int_to_ptr.hbm [resolvable:$true] %s65_s18 }
   0x5   :  { %s37_s15 = sshll.u32 %s1152_s14, 4  ;;  %s1153_s19 = smov 128   ;;  %s38_s15 = int_to_ptr.vmem [resolvable:$true] %s37_s15 }
   0x6   :  { %s1154_s20 = smov 8   ;;  %s1155_s21 = smov [#allocation8]  }
   0x7   :  { %43 = dma.hbm_to_vmem [thread:$0]  %s36_s6, 2048, %s38_s15, [#allocation6], %s1153_s19, %s1153_s19, %s1154_s20  }
   0x8   :  { %s67_s22 = sshll.u32 %s1155_s21, 4  ;;  %s25_s25 = sshll.u32 %s1245_s0, 4  ;;  %s68_s22 = int_to_ptr.vmem [resolvable:$true] %s67_s22  ;;  %s26_s25 = int_to_ptr.hbm [resolvable:$true] %s25_s25 }
   0x9   :  { %73 = dma.hbm_to_vmem [thread:$0]  %s66_s18, 2048, %s68_s22, [#allocation9], %s1153_s19, %s1153_s19, %s1154_s20  }
   0xa   :  { %s50_s27 = sshll.u32 %s1248_s3, 4  ;;  %s1156_s28 = smov [#allocation2]   ;;  %s51_s27 = int_to_ptr.hbm [resolvable:$true] %s50_s27 }
   0xb   :  { %s27_s29 = sshll.u32 %s1156_s28, 4  ;;  %s1157_s5 = smov [#allocation7]   ;;  %s28_s29 = int_to_ptr.vmem [resolvable:$true] %s27_s29 }
   0xc   :  { %30 = dma.hbm_to_vmem [thread:$0]  %s26_s25, 128, %s28_s29, [#allocation3]  }
   0xd   :  { %s52_s2 = sshll.u32 %s1157_s5, 4  ;;  %s1158_s30 = smov 64   ;;  %s53_s2 = int_to_ptr.vmem [resolvable:$true] %s52_s2 }
   0xe   :  { %s1159_s11 = smov 4   ;;  %s80_s13 = sshll.u32 %s1252_s7, 4  ;;  %s81_s13 = int_to_ptr.hbm [resolvable:$true] %s80_s13 }
   0xf   :  { %58 = dma.hbm_to_vmem [thread:$0]  %s51_s27, 1024, %s53_s2, [#allocation6], %s1158_s30, %s1158_s30, %s1159_s11  }
  0x10   :  { %s1160_s6 = smov [#allocation10]   ;;  %s95_s16 = sshll.u32 %s1254_s9, 4  ;;  %s96_s16 = int_to_ptr.hbm [resolvable:$true] %s95_s16 }
  0x11   :  { %s82_s14 = sshll.u32 %s1160_s6, 4  ;;  %s1161_s17 = smov [#allocation11]   ;;  %s83_s14 = int_to_ptr.vmem [resolvable:$true] %s82_s14 }
  0x12   :  { %88 = dma.hbm_to_vmem [thread:$0]  %s81_s13, 1024, %s83_s14, [#allocation9], %s1158_s30, %s1158_s30, %s1159_s11  }
  0x13   :  { %s97_s18 = sshll.u32 %s1161_s17, 4  ;;  %s98_s18 = int_to_ptr.vmem [resolvable:$true] %s97_s18 }
  0x14   :  { %103 = dma.hbm_to_vmem [thread:$0]  %s96_s16, 2048, %s98_s18, [#allocation12], %s1158_s30, %s1158_s30, %s1159_s11  }
  0x15   :  { %1142 = dma.done.wait [#allocation3], 128  }
  0x16   :  { %1143 = vsyncadd [#allocation3], 4294967168 }
  0x17   :  { %1144 = dma.done.wait [#allocation6], 3072  }
  0x18   :  { %1145 = vsyncadd [#allocation6], 4294964224 }
  0x19   :  { %1146 = dma.done.wait [#allocation9], 3072  }
  0x1a   :  { %1147 = vsyncadd [#allocation9], 4294964224 }
  0x1b   :  { %1148 = dma.done.wait [#allocation12], 2048  }
  0x1c   :  { %1149 = vsyncadd [#allocation12], 4294965248  ;;  %v739_v0 = vld [vmem:[#allocation5 + $0x70] sm:$0xf]  ;;  %v920_v1 = vld [vmem:[#allocation5 + $0x74] sm:$0xf0] }
  0x1d   :  { %v731_v2 = vld [vmem:[#allocation5 + $0x60] sm:$0xf]  ;;  %v740_v3 = vor.u32 %v920_v1, %v739_v0  ;;  %v918_v4 = vld [vmem:[#allocation5 + $0x64] sm:$0xf0]  ;;  %v723_v6 = vld [vmem:[#allocation5 + $0x50] sm:$0xf] }
  0x1e   :  { %v732_v5 = vor.u32 %v918_v4, %v731_v2  ;;  %v916_v7 = vld [vmem:[#allocation5 + $0x54] sm:$0xf0]  ;;  %v919_v9 = vld [vmem:[#allocation5 + $0x74] sm:$0xf]  ;;  %v741_v10 = vld [vmem:[#allocation5 + $0x78] sm:$0xf0] }
  0x1f   :  { %226 = vmatpush.bf16.msra.mxu0 %v740_v3  ;;  %v928_v8 = vld [vmem:[#allocation7 + $0x38] sm:$0xff]  ;;  %v724_v11 = vor.u32 %v916_v7, %v723_v6  ;;  %v744_v12 = vor.u32 %v919_v9, %v741_v10  ;;  %v927_v13 = vld [vmem:[#allocation7 + $0x30] sm:$0xff]  ;;  %v917_v14 = vld [vmem:[#allocation5 + $0x64] sm:$0xf]  ;;  %s1162_s20 = smov [#allocation13]   ;;  %s668_s24 = sshll.u32 %s1255_s10, 4  ;;  %s669_s24 = int_to_ptr.hbm [resolvable:$true] %s668_s24 }
  0x20   :  { %323 = vmatpush.bf16.msra.mxu2 %v928_v8  ;;  %v733_v15 = vld [vmem:[#allocation5 + $0x68] sm:$0xf0]  ;;  %v715_v16 = vld [vmem:[#allocation5 + $0x40] sm:$0xf]  ;;  %v914_v17 = vld [vmem:[#allocation5 + $0x44] sm:$0xf0] }
  0x21   :  { %239 = vmatpush.bf16.msra.mxu1 %v744_v12  ;;  %v736_v18 = vor.u32 %v917_v14, %v733_v15  ;;  %v915_v19 = vld [vmem:[#allocation5 + $0x54] sm:$0xf]  ;;  %v725_v20 = vld [vmem:[#allocation5 + $0x58] sm:$0xf0]  ;;  %v716_v21 = vor.u32 %v914_v17, %v715_v16  ;;  %v926_v22 = vld [vmem:[#allocation7 + $0x28] sm:$0xff]  ;;  %s666_s21 = sshll.u32 %s1162_s20, 4  ;;  %s667_s21 = int_to_ptr.vmem [resolvable:$true] %s666_s21 }
  0x22   :  { %v707_v23 = vld [vmem:[#allocation5 + $0x30] sm:$0xf]  ;;  %v912_v24 = vld [vmem:[#allocation5 + $0x34] sm:$0xf0]  ;;  %v728_v25 = vor.u32 %v915_v19, %v725_v20  ;;  %v913_v26 = vld [vmem:[#allocation5 + $0x44] sm:$0xf] }
  0x23   :  { %227 = vmatpush.bf16.msra.mxu0 %v732_v5  ;;  %v717_v27 = vld [vmem:[#allocation5 + $0x48] sm:$0xf0]  ;;  %v708_v28 = vor.u32 %v912_v24, %v707_v23  ;;  %v925_v29 = vld [vmem:[#allocation7 + $0x20] sm:$0xff]  ;;  %v910_v31 = vld [vmem:[#allocation5 + $0x24] sm:$0xf0] }
  0x24   :  { %324 = vmatpush.bf16.msra.mxu2 %v927_v13  ;;  %v699_v30 = vld [vmem:[#allocation5 + $0x20] sm:$0xf]  ;;  %v720_v32 = vor.u32 %v913_v26, %v717_v27  ;;  %v911_v33 = vld [vmem:[#allocation5 + $0x34] sm:$0xf]  ;;  %v709_v34 = vld [vmem:[#allocation5 + $0x38] sm:$0xf0] }
  0x25   :  { %240 = vmatpush.bf16.msra.mxu1 %v736_v18  ;;  %v700_v35 = vor.u32 %v910_v31, %v699_v30  ;;  %v924_v36 = vld [vmem:[#allocation7 + $0x18] sm:$0xff]  ;;  %v691_v37 = vld [vmem:[#allocation5 + $0x10] sm:$0xf]  ;;  %v712_v39 = vor.u32 %v911_v33, %v709_v34  ;;  %v683_v42 = vld [vmem:[#allocation5] sm:$0xf] }
  0x26   :  { %v908_v38 = vld [vmem:[#allocation5 + $0x14] sm:$0xf0]  ;;  %v923_v41 = vld [vmem:[#allocation7 + $0x10] sm:$0xff]  ;;  %v906_v43 = vld [vmem:[#allocation5 + $0x4] sm:$0xf0] }
  0x27   :  { %228 = vmatpush.bf16.msra.mxu0 %v724_v11  ;;  %v692_v40 = vor.u32 %v908_v38, %v691_v37  ;;  %v684_v44 = vor.u32 %v906_v43, %v683_v42  ;;  %v128_v45 = vld [vmem:[#allocation2] sm:$0xff]  ;;  %v909_v47 = vld [vmem:[#allocation5 + $0x24] sm:$0xf]  ;;  %v701_v48 = vld [vmem:[#allocation5 + $0x28] sm:$0xf0] }
  0x28   :  { %325 = vmatpush.bf16.msra.mxu2 %v926_v22  ;;  %v129_v46 = vpack.c.bf16 %v128_v45, %v128_v45  ;;  %v704_v49 = vor.u32 %v909_v47, %v701_v48  ;;  %v922_v50 = vld [vmem:[#allocation7 + $0x8] sm:$0xff]  ;;  %v907_v51 = vld [vmem:[#allocation5 + $0x14] sm:$0xf]  ;;  %v693_v52 = vld [vmem:[#allocation5 + $0x18] sm:$0xf0] }
  0x29   :  { %241 = vmatpush.bf16.msra.mxu1 %v728_v25  ;;  %v696_v53 = vor.u32 %v907_v51, %v693_v52  ;;  %v921_v54 = vld [vmem:[#allocation7] sm:$0xff]  ;;  %v685_v56 = vld [vmem:[#allocation5 + $0x8] sm:$0xf0]  ;;  %v952_v58 = vld [vmem:[#allocation11 + $0x38] sm:$0xff] }
  0x2a   :  { %v905_v55 = vld [vmem:[#allocation5 + $0x4] sm:$0xf]  ;;  %v807_v59 = vld [vmem:[#allocation8 + $0x70] sm:$0xf]  ;;  %v936_v60 = vld [vmem:[#allocation8 + $0x74] sm:$0xf0] }
  0x2b   :  { %229 = vmatpush.bf16.msra.mxu0 %v716_v21  ;;  %v688_v57 = vor.u32 %v905_v55, %v685_v56  ;;  %v808_v61 = vor.u32 %v936_v60, %v807_v59  ;;  %v803_v62 = vld [vmem:[#allocation8 + $0x60] sm:$0xf]  ;;  %v935_v63 = vld [vmem:[#allocation8 + $0x64] sm:$0xf0]  ;;  %v951_v0 = vld [vmem:[#allocation11 + $0x30] sm:$0xff] }
  0x2c   :  { %326 = vmatpush.bf16.msra.mxu2 %v925_v29  ;;  %v804_v1 = vor.u32 %v935_v63, %v803_v62  ;;  %v799_v2 = vld [vmem:[#allocation8 + $0x50] sm:$0xf]  ;;  %v934_v3 = vld [vmem:[#allocation8 + $0x54] sm:$0xf0]  ;;  %v950_v4 = vld [vmem:[#allocation11 + $0x28] sm:$0xff] }
  0x2d   :  { %242 = vmatpush.bf16.msra.mxu1 %v720_v32  ;;  %406 = vmatpush.bf16.msra.mxu3 %v808_v61  ;;  %v800_v5 = vor.u32 %v934_v3, %v799_v2  ;;  %v795_v6 = vld [vmem:[#allocation8 + $0x40] sm:$0xf]  ;;  %v933_v7 = vld [vmem:[#allocation8 + $0x44] sm:$0xf0]  ;;  %v948_v10 = vld [vmem:[#allocation11 + $0x18] sm:$0xff] }
  0x2e   :  { %v949_v8 = vld [vmem:[#allocation11 + $0x20] sm:$0xff]  ;;  %v796_v9 = vor.u32 %v933_v7, %v795_v6  ;;  %v791_v16 = vld [vmem:[#allocation8 + $0x30] sm:$0xf]  ;;  %v932_v17 = vld [vmem:[#allocation8 + $0x34] sm:$0xf0] }
  0x2f   :  { %230 = vmatpush.bf16.msra.mxu0 %v708_v28  ;;  %v947_v18 = vld [vmem:[#allocation11 + $0x10] sm:$0xff]  ;;  %v792_v19 = vor.u32 %v932_v17, %v791_v16  ;;  %v787_v21 = vld [vmem:[#allocation8 + $0x20] sm:$0xf]  ;;  %v931_v22 = vld [vmem:[#allocation8 + $0x24] sm:$0xf0] }
  0x30   :  { %327 = vmatpush.bf16.msra.mxu2 %v924_v36  ;;  %v788_v23 = vor.u32 %v931_v22, %v787_v21  ;;  %v946_v24 = vld [vmem:[#allocation11 + $0x8] sm:$0xff]  ;;  %v783_v25 = vld [vmem:[#allocation8 + $0x10] sm:$0xf]  ;;  %v930_v26 = vld [vmem:[#allocation8 + $0x14] sm:$0xf0] }
  0x31   :  { %243 = vmatpush.bf16.msra.mxu1 %v712_v39  ;;  %407 = vmatpush.bf16.msra.mxu3 %v804_v1  ;;  %v784_v27 = vor.u32 %v930_v26, %v783_v25  ;;  %v945_v28 = vld [vmem:[#allocation11] sm:$0xff]  ;;  %v929_v31 = vld [vmem:[#allocation8 + $0x4] sm:$0xf0]  ;;  %v944_v33 = vld [vmem:[#allocation10 + $0x38] sm:$0xff] }
  0x32   :  { %v779_v30 = vld [vmem:[#allocation8] sm:$0xf]  ;;  %v943_v34 = vld [vmem:[#allocation10 + $0x30] sm:$0xff]  ;;  %v972_v37 = vld [vmem:[%s1249_s4] ss:$0 sm:$0xff] }
  0x33   :  { %231 = vmatpush.bf16.msra.mxu0 %v700_v35  ;;  %v780_v32 = vor.u32 %v929_v31, %v779_v30  ;;  %v942_v35 = vld [vmem:[#allocation10 + $0x28] sm:$0xff]  ;;  %v941_v36 = vld [vmem:[#allocation10 + $0x20] sm:$0xff]  ;;  %v940_v47 = vld [vmem:[#allocation10 + $0x18] sm:$0xff] }
  0x34   :  { %328 = vmatpush.bf16.msra.mxu2 %v923_v41  ;;  %v939_v48 = vld [vmem:[#allocation10 + $0x10] sm:$0xff]  ;;  %v960_v51 = vld [vmem:[#allocation11 + $0x78] sm:$0xff]  ;;  %v953_v1 = vld [vmem:[#allocation11 + $0x40] sm:$0xff] }
  0x35   :  { %244 = vmatpush.bf16.msra.mxu1 %v704_v49  ;;  %408 = vmatpush.bf16.msra.mxu3 %v800_v5  ;;  %v938_v49 = vld [vmem:[#allocation10 + $0x8] sm:$0xff]  ;;  %v959_v52 = vld [vmem:[#allocation11 + $0x70] sm:$0xff]  ;;  %v956_v56 = vld [vmem:[#allocation11 + $0x58] sm:$0xff] }
  0x36   :  { %v973_v2 = vld [vmem:[%s1253_s8] ss:$0 sm:$0xff] }
  0x37   :  { %232 = vmatpush.bf16.msra.mxu0 %v692_v40 }
  0x38   :  { %329 = vmatpush.bf16.msra.mxu2 %v922_v50  ;;  %v937_v50 = vld [vmem:[#allocation10] sm:$0xff] }
  0x39   :  { %245 = vmatpush.bf16.msra.mxu1 %v696_v53  ;;  %409 = vmatpush.bf16.msra.mxu3 %v796_v9  ;;  %v958_v53 = vld [vmem:[#allocation11 + $0x68] sm:$0xff] }
  0x3b   :  { %233 = vmatpush.bf16.msra.mxu0 %v684_v44 }
  0x3c   :  { %330 = vmatpush.bf16.msra.mxu2 %v921_v54  ;;  %v957_v54 = vld [vmem:[#allocation11 + $0x60] sm:$0xff] }
  0x3d   :  { %246 = vmatpush.bf16.msra.mxu1 %v688_v57  ;;  %410 = vmatpush.bf16.msra.mxu3 %v792_v19  ;;  %v955_v57 = vld [vmem:[#allocation11 + $0x50] sm:$0xff] }
  0x3e   :  { %234 = vmatmul.bf16.vlgmr.msra.gmra.mxu0 %v129_v46 }
  0x3f   :  { %490 = vmatpush.bf16.msrb.mxu0 %v944_v33 }
  0x40   :  { %247 = vmatmul.bf16.vlgmr.msra.gmra.mxu1 %v129_v46  ;;  %647 = vmatpush.bf16.msrb.mxu2 %v960_v51 }
  0x41   :  { %634 = vmatpush.bf16.msrb.mxu1 %v952_v58  ;;  %411 = vmatpush.bf16.msra.mxu3 %v788_v23 }
  0x43   :  { %491 = vmatpush.bf16.msrb.mxu0 %v943_v34 }
  0x44   :  { %648 = vmatpush.bf16.msrb.mxu2 %v959_v52 }
  0x45   :  { %635 = vmatpush.bf16.msrb.mxu1 %v951_v0  ;;  %412 = vmatpush.bf16.msra.mxu3 %v784_v27  ;;  %v954_v0 = vld [vmem:[#allocation11 + $0x48] sm:$0xff] }
  0x47   :  { %492 = vmatpush.bf16.msrb.mxu0 %v942_v35 }
  0x48   :  { %649 = vmatpush.bf16.msrb.mxu2 %v958_v53 }
  0x49   :  { %636 = vmatpush.bf16.msrb.mxu1 %v950_v4  ;;  %413 = vmatpush.bf16.msra.mxu3 %v780_v32 }
  0x4b   :  { %493 = vmatpush.bf16.msrb.mxu0 %v941_v36 }
  0x4c   :  { %650 = vmatpush.bf16.msrb.mxu2 %v957_v54 }
  0x4d   :  { %637 = vmatpush.bf16.msrb.mxu1 %v949_v8 }
  0x4f   :  { %494 = vmatpush.bf16.msrb.mxu0 %v940_v47 }
  0x50   :  { %651 = vmatpush.bf16.msrb.mxu2 %v956_v56 }
  0x51   :  { %638 = vmatpush.bf16.msrb.mxu1 %v948_v10 }
  0x53   :  { %495 = vmatpush.bf16.msrb.mxu0 %v939_v48 }
  0x54   :  { %652 = vmatpush.bf16.msrb.mxu2 %v955_v57 }
  0x55   :  { %639 = vmatpush.bf16.msrb.mxu1 %v947_v18 }
  0x57   :  { %496 = vmatpush.bf16.msrb.mxu0 %v938_v49 }
  0x58   :  { %653 = vmatpush.bf16.msrb.mxu2 %v954_v0 }
  0x59   :  { %640 = vmatpush.bf16.msrb.mxu1 %v946_v24 }
  0x5b   :  { %497 = vmatpush.bf16.msrb.mxu0 %v937_v50 }
  0x5c   :  { %654 = vmatpush.bf16.msrb.mxu2 %v953_v1 }
  0x5d   :  { %641 = vmatpush.bf16.msrb.mxu1 %v945_v28 }
  0xbb   :  { %v235_v11 = vpop.f32.mrf.mxu0 }
  0xbc   :  { %v252_v12 = vmul.f32 0.01, %v235_v11 }
  0xbd   :  { %v248_v20 = vpop.f32.mrf.mxu1 }
  0xbe   :  { %v253_v13 = vmax.f32 %v235_v11, %v252_v12 }
  0xc0   :  { %v271_v14 = vpack.c.bf16 %v253_v13, %v253_v13 }
  0xc2   :  { %331 = vmatmul.bf16.vlgmr.msra.gmra.mxu2 %v271_v14 }
  0xc3   :  { %v237_v15 = vpop.f32.mrf.mxu0 }
  0xc5   :  { %v250_v29 = vpop.f32.mrf.mxu1 }
 0x145   :  { %v332_v38 = vpop.f32.mrf.mxu2 }
 0x146   :  { %v333_v39 = vadd.f32 %v972_v37, %v332_v38 }
 0x148   :  { %v336_v40 = vmul.f32 0.01, %v333_v39 }
 0x14a   :  { %v337_v41 = vmax.f32 %v333_v39, %v336_v40 }
 0x14c   :  { %v338_v42 = vpack.c.bf16 %v337_v41, %v337_v41  ;;  %v339_v43 = vadd.f32 %v337_v41, %v248_v20 }
 0x14d   :  { %v334_v44 = vpop.f32.mrf.mxu2 }
 0x14e   :  { %642 = vmatmul.bf16.vlgmr.msrb.gmra.mxu1 %v338_v42  ;;  %v340_v45 = vmax.f32 %v339_v43, 0.0 }
 0x150   :  { %v341_v46 = vpack.c.bf16 %v340_v45, %v340_v45 }
 0x152   :  { %414 = vmatmul.bf16.vlgmr.msra.gmra.mxu3 %v341_v46 }
 0x1cb   :  { %v643_v55 = vpop.f32.mrf.mxu1 }
 0x1d3   :  { %v645_v58 = vpop.f32.mrf.mxu1 }
 0x1d5   :  { %v415_v59 = vpop.f32.mrf.mxu3 }
 0x1d6   :  { %v419_v60 = vmul.f32 0.01, %v415_v59 }
 0x1d8   :  { %v420_v61 = vmax.f32 %v415_v59, %v419_v60 }
 0x1da   :  { %v438_v62 = vpack.c.bf16 %v420_v61, %v420_v61 }
 0x1dc   :  { %498 = vmatmul.bf16.vlgmr.msrb.gmra.mxu0 %v438_v62 }
 0x1dd   :  { %v417_v63 = vpop.f32.mrf.mxu3 }
 0x259   :  { %v499_v3 = vpop.f32.mrf.mxu0 }
 0x25a   :  { %v500_v4 = vadd.f32 %v973_v2, %v499_v3 }
 0x25c   :  { %v503_v5 = vmul.f32 0.01, %v500_v4 }
 0x25e   :  { %v504_v6 = vmax.f32 %v500_v4, %v503_v5 }
 0x260   :  { %v505_v7 = vpack.c.bf16 %v504_v6, %v504_v6 }
 0x261   :  { %v501_v8 = vpop.f32.mrf.mxu0 }
 0x262   :  { %655 = vmatmul.bf16.vlgmr.msrb.gmra.mxu2 %v505_v7 }
 0x2e5   :  { %v656_v9 = vpop.f32.mrf.mxu2 }
 0x2e6   :  { %v657_v10 = vadd.f32 %v656_v9, %v643_v55 }
 0x2e8   :  { %660 = vst [vmem:[#allocation13] sm:$0xff] %v657_v10 }
 0x2e9   :  { %671 = dma.vmem_to_hbm [thread:$0]  %s667_s21, 128, %s669_s24, [#allocation4]  }
 0x2ed   :  { %v658_v11 = vpop.f32.mrf.mxu2 }
 0x2ee   :  { %1150 = dma.done.wait [#allocation4], 128  }
 0x2ef   :  { %1151 = vsyncadd [#allocation4], 4294967168 }
 0x2f0   :  { %676 = vsyncpa [#allocation3], 1 }
 0x2f1   :  { %677 = vsyncpa [#allocation6], 1 }
 0x2f2   :  { %678 = vsyncpa [#allocation9], 1 }
 0x2f3   :  { %679 = vsyncpa [#allocation12], 1 }
 0x2f4   :  { %680 = vsyncpa [#allocation4], 1 }

// kernel: tpu_custom_call.1
= control target key start
LH: loop header
LB: loop body
LE: loop exit
PB: predicated region body
PF: predicated region fallthrough
CT: control target
= control target key end

     0   :  { %15 = vsyncpa [#allocation3], 0  ;;  %s1245_s0 = inlined_call_operand.hbm [shape: f32[8,128], index: 0, kind: input, shape index: {}]   ;;  %s1246_s1 = inlined_call_operand.hbm [shape: bf16[128,256], index: 1, kind: input, shape index: {}]   ;;  %s1247_s2 = inlined_call_operand.vmem [shape: f32[1,128], index: 2, kind: input, shape index: {}]   ;;  %s1248_s3 = inlined_call_operand.hbm [shape: bf16[128,128], index: 3, kind: input, shape index: {}]   ;;  %s1249_s4 = inlined_call_operand.vmem [shape: f32[1,128], index: 4, kind: input, shape index: {}]   ;;  %s1250_s5 = inlined_call_operand.hbm [shape: bf16[128,256], index: 5, kind: input, shape index: {}]   ;;  %s1251_s6 = inlined_call_operand.vmem [shape: f32[1,128], index: 6, kind: input, shape index: {}]   ;;  %s1252_s7 = inlined_call_operand.hbm [shape: bf16[128,128], index: 7, kind: input, shape index: {}]   ;;  %s1253_s8 = inlined_call_operand.vmem [shape: f32[1,128], index: 8, kind: input, shape index: {}]   ;;  %s1254_s9 = inlined_call_operand.hbm [shape: bf16[256,128], index: 9, kind: input, shape index: {}]   ;;  %s1255_s10 = inlined_call_operand.hbm [shape: f32[8,128], index: 10, kind: output, shape index: {}]  }
   0x1   :  { %16 = vsyncpa [#allocation6], 0 }
   0x2   :  { %17 = vsyncpa [#allocation9], 0 }
   0x3   :  { %18 = vsyncpa [#allocation12], 0  ;;  %s35_s6 = sshll.u32 %s1246_s1, 4  ;;  %s36_s6 = int_to_ptr.hbm [resolvable:$true] %s35_s6 }
   0x4   :  { %19 = vsyncpa [#allocation4], 0  ;;  %s1152_s14 = smov [#allocation5]   ;;  %s65_s18 = sshll.u32 %s1250_s5, 4  ;;  %s66_s18 = int_to_ptr.hbm [resolvable:$true] %s65_s18 }
   0x5   :  { %s37_s15 = sshll.u32 %s1152_s14, 4  ;;  %s1153_s19 = smov 128   ;;  %s38_s15 = int_to_ptr.vmem [resolvable:$true] %s37_s15 }
   0x6   :  { %s1154_s20 = smov 8   ;;  %s1155_s21 = smov [#allocation8]  }
   0x7   :  { %43 = dma.hbm_to_vmem [thread:$0]  %s36_s6, 2048, %s38_s15, [#allocation6], %s1153_s19, %s1153_s19, %s1154_s20  }
   0x8   :  { %s67_s22 = sshll.u32 %s1155_s21, 4  ;;  %s25_s25 = sshll.u32 %s1245_s0, 4  ;;  %s68_s22 = int_to_ptr.vmem [resolvable:$true] %s67_s22  ;;  %s26_s25 = int_to_ptr.hbm [resolvable:$true] %s25_s25 }
   0x9   :  { %73 = dma.hbm_to_vmem [thread:$0]  %s66_s18, 2048, %s68_s22, [#allocation9], %s1153_s19, %s1153_s19, %s1154_s20  }
   0xa   :  { %s50_s27 = sshll.u32 %s1248_s3, 4  ;;  %s1156_s28 = smov [#allocation2]   ;;  %s51_s27 = int_to_ptr.hbm [resolvable:$true] %s50_s27 }
   0xb   :  { %s27_s29 = sshll.u32 %s1156_s28, 4  ;;  %s1157_s5 = smov [#allocation7]   ;;  %s28_s29 = int_to_ptr.vmem [resolvable:$true] %s27_s29 }
   0xc   :  { %30 = dma.hbm_to_vmem [thread:$0]  %s26_s25, 128, %s28_s29, [#allocation3]  }
   0xd   :  { %s52_s2 = sshll.u32 %s1157_s5, 4  ;;  %s1158_s30 = smov 64   ;;  %s53_s2 = int_to_ptr.vmem [resolvable:$true] %s52_s2 }
   0xe   :  { %s1159_s11 = smov 4   ;;  %s80_s13 = sshll.u32 %s1252_s7, 4  ;;  %s81_s13 = int_to_ptr.hbm [resolvable:$true] %s80_s13 }
   0xf   :  { %58 = dma.hbm_to_vmem [thread:$0]  %s51_s27, 1024, %s53_s2, [#allocation6], %s1158_s30, %s1158_s30, %s1159_s11  }
  0x10   :  { %s1160_s6 = smov [#allocation10]   ;;  %s95_s16 = sshll.u32 %s1254_s9, 4  ;;  %s96_s16 = int_to_ptr.hbm [resolvable:$true] %s95_s16 }
  0x11   :  { %s82_s14 = sshll.u32 %s1160_s6, 4  ;;  %s1161_s17 = smov [#allocation11]   ;;  %s83_s14 = int_to_ptr.vmem [resolvable:$true] %s82_s14 }
  0x12   :  { %88 = dma.hbm_to_vmem [thread:$0]  %s81_s13, 1024, %s83_s14, [#allocation9], %s1158_s30, %s1158_s30, %s1159_s11  }
  0x13   :  { %s97_s18 = sshll.u32 %s1161_s17, 4  ;;  %s98_s18 = int_to_ptr.vmem [resolvable:$true] %s97_s18 }
  0x14   :  { %103 = dma.hbm_to_vmem [thread:$0]  %s96_s16, 2048, %s98_s18, [#allocation12], %s1158_s30, %s1158_s30, %s1159_s11  }
  0x15   :  { %1142 = dma.done.wait [#allocation3], 128  }
  0x16   :  { %1143 = vsyncadd [#allocation3], 4294967168 }
  0x17   :  { %1144 = dma.done.wait [#allocation6], 3072  }
  0x18   :  { %1145 = vsyncadd [#allocation6], 4294964224 }
  0x19   :  { %1146 = dma.done.wait [#allocation9], 3072  }
  0x1a   :  { %1147 = vsyncadd [#allocation9], 4294964224 }
  0x1b   :  { %1148 = dma.done.wait [#allocation12], 2048  }
  0x1c   :  { %1149 = vsyncadd [#allocation12], 4294965248  ;;  %v739_v0 = vld [vmem:[#allocation5 + $0x70] sm:$0xf]  ;;  %v920_v1 = vld [vmem:[#allocation5 + $0x74] sm:$0xf0] }
  0x1d   :  { %v731_v2 = vld [vmem:[#allocation5 + $0x60] sm:$0xf]  ;;  %v740_v3 = vor.u32 %v920_v1, %v739_v0  ;;  %v918_v4 = vld [vmem:[#allocation5 + $0x64] sm:$0xf0]  ;;  %v723_v6 = vld [vmem:[#allocation5 + $0x50] sm:$0xf] }
  0x1e   :  { %v732_v5 = vor.u32 %v918_v4, %v731_v2  ;;  %v916_v7 = vld [vmem:[#allocation5 + $0x54] sm:$0xf0]  ;;  %v919_v9 = vld [vmem:[#allocation5 + $0x74] sm:$0xf]  ;;  %v741_v10 = vld [vmem:[#allocation5 + $0x78] sm:$0xf0] }
  0x1f   :  { %226 = vmatpush.bf16.msra.mxu0 %v740_v3  ;;  %v928_v8 = vld [vmem:[#allocation7 + $0x38] sm:$0xff]  ;;  %v724_v11 = vor.u32 %v916_v7, %v723_v6  ;;  %v744_v12 = vor.u32 %v919_v9, %v741_v10  ;;  %v927_v13 = vld [vmem:[#allocation7 + $0x30] sm:$0xff]  ;;  %v917_v14 = vld [vmem:[#allocation5 + $0x64] sm:$0xf]  ;;  %s1162_s20 = smov [#allocation13]   ;;  %s668_s24 = sshll.u32 %s1255_s10, 4  ;;  %s669_s24 = int_to_ptr.hbm [resolvable:$true] %s668_s24 }
  0x20   :  { %323 = vmatpush.bf16.msra.mxu2 %v928_v8  ;;  %v733_v15 = vld [vmem:[#allocation5 + $0x68] sm:$0xf0]  ;;  %v715_v16 = vld [vmem:[#allocation5 + $0x40] sm:$0xf]  ;;  %v914_v17 = vld [vmem:[#allocation5 + $0x44] sm:$0xf0] }
  0x21   :  { %239 = vmatpush.bf16.msra.mxu1 %v744_v12  ;;  %v736_v18 = vor.u32 %v917_v14, %v733_v15  ;;  %v915_v19 = vld [vmem:[#allocation5 + $0x54] sm:$0xf]  ;;  %v725_v20 = vld [vmem:[#allocation5 + $0x58] sm:$0xf0]  ;;  %v716_v21 = vor.u32 %v914_v17, %v715_v16  ;;  %v926_v22 = vld [vmem:[#allocation7 + $0x28] sm:$0xff]  ;;  %s666_s21 = sshll.u32 %s1162_s20, 4  ;;  %s667_s21 = int_to_ptr.vmem [resolvable:$true] %s666_s21 }
  0x22   :  { %v707_v23 = vld [vmem:[#allocation5 + $0x30] sm:$0xf]  ;;  %v912_v24 = vld [vmem:[#allocation5 + $0x34] sm:$0xf0]  ;;  %v728_v25 = vor.u32 %v915_v19, %v725_v20  ;;  %v913_v26 = vld [vmem:[#allocation5 + $0x44] sm:$0xf] }
  0x23   :  { %227 = vmatpush.bf16.msra.mxu0 %v732_v5  ;;  %v717_v27 = vld [vmem:[#allocation5 + $0x48] sm:$0xf0]  ;;  %v708_v28 = vor.u32 %v912_v24, %v707_v23  ;;  %v925_v29 = vld [vmem:[#allocation7 + $0x20] sm:$0xff]  ;;  %v910_v31 = vld [vmem:[#allocation5 + $0x24] sm:$0xf0] }
  0x24   :  { %324 = vmatpush.bf16.msra.mxu2 %v927_v13  ;;  %v699_v30 = vld [vmem:[#allocation5 + $0x20] sm:$0xf]  ;;  %v720_v32 = vor.u32 %v913_v26, %v717_v27  ;;  %v911_v33 = vld [vmem:[#allocation5 + $0x34] sm:$0xf]  ;;  %v709_v34 = vld [vmem:[#allocation5 + $0x38] sm:$0xf0] }
  0x25   :  { %240 = vmatpush.bf16.msra.mxu1 %v736_v18  ;;  %v700_v35 = vor.u32 %v910_v31, %v699_v30  ;;  %v924_v36 = vld [vmem:[#allocation7 + $0x18] sm:$0xff]  ;;  %v691_v37 = vld [vmem:[#allocation5 + $0x10] sm:$0xf]  ;;  %v712_v39 = vor.u32 %v911_v33, %v709_v34  ;;  %v683_v42 = vld [vmem:[#allocation5] sm:$0xf] }
  0x26   :  { %v908_v38 = vld [vmem:[#allocation5 + $0x14] sm:$0xf0]  ;;  %v923_v41 = vld [vmem:[#allocation7 + $0x10] sm:$0xff]  ;;  %v906_v43 = vld [vmem:[#allocation5 + $0x4] sm:$0xf0] }
  0x27   :  { %228 = vmatpush.bf16.msra.mxu0 %v724_v11  ;;  %v692_v40 = vor.u32 %v908_v38, %v691_v37  ;;  %v684_v44 = vor.u32 %v906_v43, %v683_v42  ;;  %v128_v45 = vld [vmem:[#allocation2] sm:$0xff]  ;;  %v909_v47 = vld [vmem:[#allocation5 + $0x24] sm:$0xf]  ;;  %v701_v48 = vld [vmem:[#allocation5 + $0x28] sm:$0xf0] }
  0x28   :  { %325 = vmatpush.bf16.msra.mxu2 %v926_v22  ;;  %v129_v46 = vpack.c.bf16 %v128_v45, %v128_v45  ;;  %v704_v49 = vor.u32 %v909_v47, %v701_v48  ;;  %v922_v50 = vld [vmem:[#allocation7 + $0x8] sm:$0xff]  ;;  %v907_v51 = vld [vmem:[#allocation5 + $0x14] sm:$0xf]  ;;  %v693_v52 = vld [vmem:[#allocation5 + $0x18] sm:$0xf0] }
  0x29   :  { %241 = vmatpush.bf16.msra.mxu1 %v728_v25  ;;  %v696_v53 = vor.u32 %v907_v51, %v693_v52  ;;  %v921_v54 = vld [vmem:[#allocation7] sm:$0xff]  ;;  %v685_v56 = vld [vmem:[#allocation5 + $0x8] sm:$0xf0]  ;;  %v952_v58 = vld [vmem:[#allocation11 + $0x38] sm:$0xff] }
  0x2a   :  { %v905_v55 = vld [vmem:[#allocation5 + $0x4] sm:$0xf]  ;;  %v807_v59 = vld [vmem:[#allocation8 + $0x70] sm:$0xf]  ;;  %v936_v60 = vld [vmem:[#allocation8 + $0x74] sm:$0xf0] }
  0x2b   :  { %229 = vmatpush.bf16.msra.mxu0 %v716_v21  ;;  %v688_v57 = vor.u32 %v905_v55, %v685_v56  ;;  %v808_v61 = vor.u32 %v936_v60, %v807_v59  ;;  %v803_v62 = vld [vmem:[#allocation8 + $0x60] sm:$0xf]  ;;  %v935_v63 = vld [vmem:[#allocation8 + $0x64] sm:$0xf0]  ;;  %v951_v0 = vld [vmem:[#allocation11 + $0x30] sm:$0xff] }
  0x2c   :  { %326 = vmatpush.bf16.msra.mxu2 %v925_v29  ;;  %v804_v1 = vor.u32 %v935_v63, %v803_v62  ;;  %v799_v2 = vld [vmem:[#allocation8 + $0x50] sm:$0xf]  ;;  %v934_v3 = vld [vmem:[#allocation8 + $0x54] sm:$0xf0]  ;;  %v950_v4 = vld [vmem:[#allocation11 + $0x28] sm:$0xff] }
  0x2d   :  { %242 = vmatpush.bf16.msra.mxu1 %v720_v32  ;;  %406 = vmatpush.bf16.msra.mxu3 %v808_v61  ;;  %v800_v5 = vor.u32 %v934_v3, %v799_v2  ;;  %v795_v6 = vld [vmem:[#allocation8 + $0x40] sm:$0xf]  ;;  %v933_v7 = vld [vmem:[#allocation8 + $0x44] sm:$0xf0]  ;;  %v948_v10 = vld [vmem:[#allocation11 + $0x18] sm:$0xff] }
  0x2e   :  { %v949_v8 = vld [vmem:[#allocation11 + $0x20] sm:$0xff]  ;;  %v796_v9 = vor.u32 %v933_v7, %v795_v6  ;;  %v791_v16 = vld [vmem:[#allocation8 + $0x30] sm:$0xf]  ;;  %v932_v17 = vld [vmem:[#allocation8 + $0x34] sm:$0xf0] }
  0x2f   :  { %230 = vmatpush.bf16.msra.mxu0 %v708_v28  ;;  %v947_v18 = vld [vmem:[#allocation11 + $0x10] sm:$0xff]  ;;  %v792_v19 = vor.u32 %v932_v17, %v791_v16  ;;  %v787_v21 = vld [vmem:[#allocation8 + $0x20] sm:$0xf]  ;;  %v931_v22 = vld [vmem:[#allocation8 + $0x24] sm:$0xf0] }
  0x30   :  { %327 = vmatpush.bf16.msra.mxu2 %v924_v36  ;;  %v788_v23 = vor.u32 %v931_v22, %v787_v21  ;;  %v946_v24 = vld [vmem:[#allocation11 + $0x8] sm:$0xff]  ;;  %v783_v25 = vld [vmem:[#allocation8 + $0x10] sm:$0xf]  ;;  %v930_v26 = vld [vmem:[#allocation8 + $0x14] sm:$0xf0] }
  0x31   :  { %243 = vmatpush.bf16.msra.mxu1 %v712_v39  ;;  %407 = vmatpush.bf16.msra.mxu3 %v804_v1  ;;  %v784_v27 = vor.u32 %v930_v26, %v783_v25  ;;  %v945_v28 = vld [vmem:[#allocation11] sm:$0xff]  ;;  %v929_v31 = vld [vmem:[#allocation8 + $0x4] sm:$0xf0]  ;;  %v944_v33 = vld [vmem:[#allocation10 + $0x38] sm:$0xff] }
  0x32   :  { %v779_v30 = vld [vmem:[#allocation8] sm:$0xf]  ;;  %v943_v34 = vld [vmem:[#allocation10 + $0x30] sm:$0xff]  ;;  %v972_v37 = vld [vmem:[%s1249_s4] ss:$0 sm:$0xff] }
  0x33   :  { %231 = vmatpush.bf16.msra.mxu0 %v700_v35  ;;  %v780_v32 = vor.u32 %v929_v31, %v779_v30  ;;  %v942_v35 = vld [vmem:[#allocation10 + $0x28] sm:$0xff]  ;;  %v941_v36 = vld [vmem:[#allocation10 + $0x20] sm:$0xff]  ;;  %v940_v47 = vld [vmem:[#allocation10 + $0x18] sm:$0xff] }
  0x34   :  { %328 = vmatpush.bf16.msra.mxu2 %v923_v41  ;;  %v939_v48 = vld [vmem:[#allocation10 + $0x10] sm:$0xff]  ;;  %v960_v51 = vld [vmem:[#allocation11 + $0x78] sm:$0xff]  ;;  %v953_v1 = vld [vmem:[#allocation11 + $0x40] sm:$0xff] }
  0x35   :  { %244 = vmatpush.bf16.msra.mxu1 %v704_v49  ;;  %408 = vmatpush.bf16.msra.mxu3 %v800_v5  ;;  %v938_v49 = vld [vmem:[#allocation10 + $0x8] sm:$0xff]  ;;  %v959_v52 = vld [vmem:[#allocation11 + $0x70] sm:$0xff]  ;;  %v956_v56 = vld [vmem:[#allocation11 + $0x58] sm:$0xff] }
  0x36   :  { %v973_v2 = vld [vmem:[%s1253_s8] ss:$0 sm:$0xff] }
  0x37   :  { %232 = vmatpush.bf16.msra.mxu0 %v692_v40 }
  0x38   :  { %329 = vmatpush.bf16.msra.mxu2 %v922_v50  ;;  %v937_v50 = vld [vmem:[#allocation10] sm:$0xff] }
  0x39   :  { %245 = vmatpush.bf16.msra.mxu1 %v696_v53  ;;  %409 = vmatpush.bf16.msra.mxu3 %v796_v9  ;;  %v958_v53 = vld [vmem:[#allocation11 + $0x68] sm:$0xff] }
  0x3b   :  { %233 = vmatpush.bf16.msra.mxu0 %v684_v44 }
  0x3c   :  { %330 = vmatpush.bf16.msra.mxu2 %v921_v54  ;;  %v957_v54 = vld [vmem:[#allocation11 + $0x60] sm:$0xff] }
  0x3d   :  { %246 = vmatpush.bf16.msra.mxu1 %v688_v57  ;;  %410 = vmatpush.bf16.msra.mxu3 %v792_v19  ;;  %v955_v57 = vld [vmem:[#allocation11 + $0x50] sm:$0xff] }
  0x3e   :  { %234 = vmatmul.bf16.vlgmr.msra.gmra.mxu0 %v129_v46 }
  0x3f   :  { %490 = vmatpush.bf16.msrb.mxu0 %v944_v33 }
  0x40   :  { %247 = vmatmul.bf16.vlgmr.msra.gmra.mxu1 %v129_v46  ;;  %647 = vmatpush.bf16.msrb.mxu2 %v960_v51 }
  0x41   :  { %634 = vmatpush.bf16.msrb.mxu1 %v952_v58  ;;  %411 = vmatpush.bf16.msra.mxu3 %v788_v23 }
  0x43   :  { %491 = vmatpush.bf16.msrb.mxu0 %v943_v34 }
  0x44   :  { %648 = vmatpush.bf16.msrb.mxu2 %v959_v52 }
  0x45   :  { %635 = vmatpush.bf16.msrb.mxu1 %v951_v0  ;;  %412 = vmatpush.bf16.msra.mxu3 %v784_v27  ;;  %v954_v0 = vld [vmem:[#allocation11 + $0x48] sm:$0xff] }
  0x47   :  { %492 = vmatpush.bf16.msrb.mxu0 %v942_v35 }
  0x48   :  { %649 = vmatpush.bf16.msrb.mxu2 %v958_v53 }
  0x49   :  { %636 = vmatpush.bf16.msrb.mxu1 %v950_v4  ;;  %413 = vmatpush.bf16.msra.mxu3 %v780_v32 }
  0x4b   :  { %493 = vmatpush.bf16.msrb.mxu0 %v941_v36 }
  0x4c   :  { %650 = vmatpush.bf16.msrb.mxu2 %v957_v54 }
  0x4d   :  { %637 = vmatpush.bf16.msrb.mxu1 %v949_v8 }
  0x4f   :  { %494 = vmatpush.bf16.msrb.mxu0 %v940_v47 }
  0x50   :  { %651 = vmatpush.bf16.msrb.mxu2 %v956_v56 }
  0x51   :  { %638 = vmatpush.bf16.msrb.mxu1 %v948_v10 }
  0x53   :  { %495 = vmatpush.bf16.msrb.mxu0 %v939_v48 }
  0x54   :  { %652 = vmatpush.bf16.msrb.mxu2 %v955_v57 }
  0x55   :  { %639 = vmatpush.bf16.msrb.mxu1 %v947_v18 }
  0x57   :  { %496 = vmatpush.bf16.msrb.mxu0 %v938_v49 }
  0x58   :  { %653 = vmatpush.bf16.msrb.mxu2 %v954_v0 }
  0x59   :  { %640 = vmatpush.bf16.msrb.mxu1 %v946_v24 }
  0x5b   :  { %497 = vmatpush.bf16.msrb.mxu0 %v937_v50 }
  0x5c   :  { %654 = vmatpush.bf16.msrb.mxu2 %v953_v1 }
  0x5d   :  { %641 = vmatpush.bf16.msrb.mxu1 %v945_v28 }
  0xbb   :  { %v235_v11 = vpop.f32.mrf.mxu0 }
  0xbc   :  { %v252_v12 = vmul.f32 0.01, %v235_v11 }
  0xbd   :  { %v248_v20 = vpop.f32.mrf.mxu1 }
  0xbe   :  { %v253_v13 = vmax.f32 %v235_v11, %v252_v12 }
  0xc0   :  { %v271_v14 = vpack.c.bf16 %v253_v13, %v253_v13 }
  0xc2   :  { %331 = vmatmul.bf16.vlgmr.msra.gmra.mxu2 %v271_v14 }
  0xc3   :  { %v237_v15 = vpop.f32.mrf.mxu0 }
  0xc5   :  { %v250_v29 = vpop.f32.mrf.mxu1 }
 0x145   :  { %v332_v38 = vpop.f32.mrf.mxu2 }
 0x146   :  { %v333_v39 = vadd.f32 %v972_v37, %v332_v38 }
 0x148   :  { %v336_v40 = vmul.f32 0.01, %v333_v39 }
 0x14a   :  { %v337_v41 = vmax.f32 %v333_v39, %v336_v40 }
 0x14c   :  { %v338_v42 = vpack.c.bf16 %v337_v41, %v337_v41  ;;  %v339_v43 = vadd.f32 %v337_v41, %v248_v20 }
 0x14d   :  { %v334_v44 = vpop.f32.mrf.mxu2 }
 0x14e   :  { %642 = vmatmul.bf16.vlgmr.msrb.gmra.mxu1 %v338_v42  ;;  %v340_v45 = vmax.f32 %v339_v43, 0.0 }
 0x150   :  { %v341_v46 = vpack.c.bf16 %v340_v45, %v340_v45 }
 0x152   :  { %414 = vmatmul.bf16.vlgmr.msra.gmra.mxu3 %v341_v46 }
 0x1cb   :  { %v643_v55 = vpop.f32.mrf.mxu1 }
 0x1d3   :  { %v645_v58 = vpop.f32.mrf.mxu1 }
 0x1d5   :  { %v415_v59 = vpop.f32.mrf.mxu3 }
 0x1d6   :  { %v419_v60 = vmul.f32 0.01, %v415_v59 }
 0x1d8   :  { %v420_v61 = vmax.f32 %v415_v59, %v419_v60 }
 0x1da   :  { %v438_v62 = vpack.c.bf16 %v420_v61, %v420_v61 }
 0x1dc   :  { %498 = vmatmul.bf16.vlgmr.msrb.gmra.mxu0 %v438_v62 }
 0x1dd   :  { %v417_v63 = vpop.f32.mrf.mxu3 }
 0x259   :  { %v499_v3 = vpop.f32.mrf.mxu0 }
 0x25a   :  { %v500_v4 = vadd.f32 %v973_v2, %v499_v3 }
 0x25c   :  { %v503_v5 = vmul.f32 0.01, %v500_v4 }
 0x25e   :  { %v504_v6 = vmax.f32 %v500_v4, %v503_v5 }
 0x260   :  { %v505_v7 = vpack.c.bf16 %v504_v6, %v504_v6 }
 0x261   :  { %v501_v8 = vpop.f32.mrf.mxu0 }
 0x262   :  { %655 = vmatmul.bf16.vlgmr.msrb.gmra.mxu2 %v505_v7 }
 0x2e5   :  { %v656_v9 = vpop.f32.mrf.mxu2 }
 0x2e6   :  { %v657_v10 = vadd.f32 %v656_v9, %v643_v55 }
 0x2e8   :  { %660 = vst [vmem:[#allocation13] sm:$0xff] %v657_v10 }
 0x2e9   :  { %671 = dma.vmem_to_hbm [thread:$0]  %s667_s21, 128, %s669_s24, [#allocation4]  }
 0x2ed   :  { %v658_v11 = vpop.f32.mrf.mxu2 }
 0x2ee   :  { %1150 = dma.done.wait [#allocation4], 128  }
 0x2ef   :  { %1151 = vsyncadd [#allocation4], 4294967168 }
 0x2f0   :  { %676 = vsyncpa [#allocation3], 1 }
 0x2f1   :  { %677 = vsyncpa [#allocation6], 1 }
 0x2f2   :  { %678 = vsyncpa [#allocation9], 1 }
 0x2f3   :  { %679 = vsyncpa [#allocation12], 1 }
 0x2f4   :  { %680 = vsyncpa [#allocation4], 1 }

</bundles_post_ra>
